<compile_context>
chip_gen: v6e
topology: v6e:2x2x1
jax: 0.10.0
libtpu: 0.0.40
codegen_flags: <defaults>
</compile_context>

<pallas_src>
import functools

import jax
import jax.numpy as jnp
from jax.experimental import pallas as pl
from jax.experimental.pallas import tpu as pltpu

LOG_STD_MIN = -10.0
LOG_STD_MAX = 2.0


def _round_up(x, m):
    return ((x + m - 1) // m) * m


def _policy_kernel(f_ref, w_ref, b_ref, out_ref, *, action_dim, temperature,
                   split_heads):
    """One batch tile.

    f_ref  : [TB, H]   features tile (batch on sublanes, hidden on lanes)
    w_ref  : [2A, H]   fused [mean; log_std] weights (torch Linear layout)
    b_ref  : [2A, 1]   fused bias (broadcasts across the batch lanes)
    out_ref: [2A, TB]  [means ; std], batch on lanes  -> lane-dense stores
    """
    # Single MXU matmul; contraction over H on both operands ("A @ B.T").
    # Result [2A, TB] is lane-dense in batch, so every subsequent VPU/EUP op
    # and the final store touch fully packed vregs.
    y = jax.lax.dot_general(
        w_ref[...], f_ref[...],
        dimension_numbers=(((1,), (1,)), ((), ())),
        preferred_element_type=jnp.float32)
    y = y + b_ref[...]                                        # [2A, TB], f32

    def squash_to_std(v):
        s = LOG_STD_MIN + (LOG_STD_MAX - LOG_STD_MIN) * 0.5 * (1.0 + jnp.tanh(v))
        std = jnp.exp(s)
        if temperature != 1.0:                                # static constant
            std = std * temperature                           # exact reference math
        return std

    if split_heads:
        # action_dim % 8 == 0: mean/std halves are separate sublane groups, so
        # slice (vreg-aligned, free) and only run tanh/exp on the std half.
        out_ref[:action_dim, :] = y[:action_dim, :].astype(out_ref.dtype)
        out_ref[action_dim:, :] = squash_to_std(
            y[action_dim:, :]).astype(out_ref.dtype)
    else:
        # Generic path: squash everything (free while 2A spans a few sublane
        # vregs) and select with a narrow (2A, 1) sublane predicate.
        std = squash_to_std(y)
        row = jax.lax.broadcasted_iota(jnp.int32, (y.shape[0], 1), 0)
        out_ref[...] = jnp.where(row >= action_dim, std, y).astype(out_ref.dtype)


def fuse_policy_params(w_mean, b_mean, w_logstd, b_logstd):
    """Fuse the two heads ONCE (at init / param-load time, not per forward).

    w_mean, w_logstd: [H, A] (JAX convention; torch weight is the transpose).
    Returns (w_fused [2A, H], b_fused [2A, 1]).  With torch params this is
    simply concat([mean_layer.weight, log_std_layer.weight], 0) and the
    concatenated biases.
    """
    A = w_mean.shape[-1]
    w_fused = jnp.concatenate([w_mean.T, w_logstd.T], axis=0)            # [2A, H]
    b_fused = jnp.concatenate([jnp.reshape(b_mean, (A, 1)),
                               jnp.reshape(b_logstd, (A, 1))], axis=0)   # [2A, 1]
    return w_fused, b_fused.astype(jnp.float32)


def normal_tanh_policy_fused(features, w_fused, b_fused, temperature=1.0,
                             tile_b=None, compute_dtype=None):
    """Run the kernel. Returns the lane-major [2A, B] slab [means ; std]."""
    B, H = features.shape
    two_a = w_fused.shape[0]
    action_dim = two_a // 2
    out_dtype = features.dtype

    # Optional bf16 feature/weight stream (halves the dominant DMA bytes).
    if compute_dtype is not None:
        features = features.astype(compute_dtype)
        w_fused = w_fused.astype(compute_dtype)

    # Batch tile: per-step footprint is tiny at these widths, so step overhead
    # (not VMEM) is the constraint -> few, fat tiles.  Keep >= 2 steps when B
    # is large so ("parallel",) shards across both TensorCores on v7x.  The
    # lane-dense output block requires tile_b to be a multiple of 128 (or the
    # full batch).
    if tile_b is None:
        if B <= 512:
            tile_b = B
        else:
            tile_b = _round_up(pl.cdiv(B, 4), 128)
            if tile_b >= B:
                tile_b = B
    else:
        tile_b = min(int(tile_b), B)
        if tile_b < B:
            tile_b = _round_up(tile_b, 128)
            if tile_b >= B:
                tile_b = B
    grid = (pl.cdiv(B, tile_b),)

    # Raise the scoped VMEM limit only if the double-buffered footprint could
    # exceed the conservative default (16 MiB v5e / 32 MiB v6e, v7x).
    in_item = jnp.dtype(features.dtype).itemsize
    out_item = jnp.dtype(out_dtype).itemsize
    vmem_bytes = (2 * tile_b * (H * in_item + two_a * out_item)
                  + two_a * (H * in_item + 4))
    cp_kwargs = dict(dimension_semantics=("parallel",))
    if vmem_bytes > 12 * 1024 * 1024:
        cp_kwargs["vmem_limit_bytes"] = int(min(100 << 20, 2 * vmem_bytes))

    kernel = functools.partial(
        _policy_kernel,
        action_dim=action_dim,
        temperature=float(temperature),
        split_heads=(action_dim % 8 == 0),
    )

    return pl.pallas_call(
        kernel,
        out_shape=jax.ShapeDtypeStruct((two_a, B), out_dtype),
        grid=grid,
        in_specs=[
            pl.BlockSpec((tile_b, H), lambda i: (i, 0)),       # features tile
            pl.BlockSpec((two_a, H), lambda i: (0, 0)),        # fused W (resident)
            pl.BlockSpec((two_a, 1), lambda i: (0, 0)),        # fused bias
        ],
        out_specs=pl.BlockSpec((two_a, tile_b), lambda i: (0, i)),  # lane-dense
        compiler_params=pltpu.CompilerParams(**cp_kwargs),
    )(features, w_fused, b_fused)


def normal_tanh_policy(features, w_mean, b_mean, w_logstd, b_logstd,
                       temperature=1.0, tile_b=None, compute_dtype=None,
                       lane_major_output=False):
    """Convenience wrapper matching the module signature.

    Returns (means, std) — the parameters of
    TanhTransform(MultivariateNormal(means, diag(std))).
    Production code should call fuse_policy_params once at init and use
    normal_tanh_policy_fused directly (avoids re-fusing W every forward).
    """
    w_fused, b_fused = fuse_policy_params(w_mean, b_mean, w_logstd, b_logstd)
    out = normal_tanh_policy_fused(features, w_fused, b_fused,
                                   temperature=temperature, tile_b=tile_b,
                                   compute_dtype=compute_dtype)
    A = w_mean.shape[-1]
    means_t, std_t = out[:A], out[A:]       # contiguous leading-axis slices
    if lane_major_output:
        return means_t, std_t               # [A, B] — avoids transpose copies
    return means_t.T, std_t.T               # [B, A] — module orientation


def _orthogonal(key, shape, gain=1.0, dtype=jnp.float32):
    """Deterministic orthogonal init (torch.nn.init.orthogonal_ semantics)."""
    rows, cols = shape
    big, small = max(rows, cols), min(rows, cols)
    a = jax.random.normal(key, (big, small), dtype=jnp.float32)
    q, r = jnp.linalg.qr(a)
    q = q * jnp.sign(jnp.diagonal(r))
    if rows < cols:
        q = q.T
    return (gain * q[:rows, :cols]).astype(dtype)


if __name__ == "__main__":
    B, H, A = 8, 32, 8
    dtype = jnp.float32

    key = jax.random.PRNGKey(0)
    k_feat, k_wm, k_ws, k_w4m, k_w4s = jax.random.split(key, 5)

    features = jax.random.normal(k_feat, (B, H), dtype=dtype)
    w_mean = _orthogonal(k_wm, (H, A), gain=1.0, dtype=dtype)
    b_mean = jnp.zeros((1, A), dtype=dtype)
    w_logstd = _orthogonal(k_ws, (H, A), gain=1.0, dtype=dtype)
    b_logstd = jnp.zeros((1, A), dtype=dtype)

    def reference(feats, wm, bm, wls, bls, temperature):
        rm = feats @ wm + jnp.reshape(bm, (1, -1))
        rls = feats @ wls + jnp.reshape(bls, (1, -1))
        rls = LOG_STD_MIN + (LOG_STD_MAX - LOG_STD_MIN) * 0.5 * (1.0 + jnp.tanh(rls))
        return rm, jnp.exp(rls) * temperature

    # 1) temperature = 1.0 (split-heads path, single tile).
    means, std = normal_tanh_policy(features, w_mean, b_mean, w_logstd, b_logstd,
                                    temperature=1.0)
    jax.block_until_ready((means, std))
    rm, rs = reference(features, w_mean, b_mean, w_logstd, b_logstd, 1.0)
    assert jnp.allclose(means, rm, atol=1e-5, rtol=1e-5)
    assert jnp.allclose(std, rs, atol=1e-5, rtol=1e-5)

    # 2) temperature != 1.0 (exact reference semantics: exp(ls) * temperature).
    m2, s2 = normal_tanh_policy(features, w_mean, b_mean, w_logstd, b_logstd,
                                temperature=0.5)
    jax.block_until_ready((m2, s2))
    rm2, rs2 = reference(features, w_mean, b_mean, w_logstd, b_logstd, 0.5)
    assert jnp.allclose(m2, rm2, atol=1e-5, rtol=1e-5)
    assert jnp.allclose(s2, rs2, atol=1e-5, rtol=1e-5)

    # 3) larger batch, params fused ONCE (hoisted), 4 lane-dense grid steps.
    B2 = 512
    feats2 = jax.random.normal(jax.random.PRNGKey(1), (B2, H), dtype=dtype)
    w_fused, b_fused = fuse_policy_params(w_mean, b_mean, w_logstd, b_logstd)
    out = normal_tanh_policy_fused(feats2, w_fused, b_fused, temperature=1.0,
                                   tile_b=128)
    jax.block_until_ready(out)
    m3, s3 = out[:A].T, out[A:].T
    rm3, rs3 = reference(feats2, w_mean, b_mean, w_logstd, b_logstd, 1.0)
    assert jnp.allclose(m3, rm3, atol=1e-5, rtol=1e-5)
    assert jnp.allclose(s3, rs3, atol=1e-5, rtol=1e-5)

    # 4) non-divisible batch: partial last tile masked on writeback.
    B3 = 200
    feats3 = jax.random.normal(jax.random.PRNGKey(2), (B3, H), dtype=dtype)
    m4, s4 = normal_tanh_policy(feats3, w_mean, b_mean, w_logstd, b_logstd,
                                temperature=1.0, tile_b=128)
    jax.block_until_ready((m4, s4))
    rm4, rs4 = reference(feats3, w_mean, b_mean, w_logstd, b_logstd, 1.0)
    assert jnp.allclose(m4, rm4, atol=1e-5, rtol=1e-5)
    assert jnp.allclose(s4, rs4, atol=1e-5, rtol=1e-5)

    # 5) action_dim not a multiple of 8 -> sublane-predicate select path.
    A2 = 4
    w_mean4 = _orthogonal(k_w4m, (H, A2), gain=1.0, dtype=dtype)
    w_logstd4 = _orthogonal(k_w4s, (H, A2), gain=1.0, dtype=dtype)
    b4 = jnp.zeros((1, A2), dtype=dtype)
    m5, s5 = normal_tanh_policy(features, w_mean4, b4, w_logstd4, b4,
                                temperature=1.0)
    jax.block_until_ready((m5, s5))
    rm5, rs5 = reference(features, w_mean4, b4, w_logstd4, b4, 1.0)
    assert jnp.allclose(m5, rm5, atol=1e-5, rtol=1e-5)
    assert jnp.allclose(s5, rs5, atol=1e-5, rtol=1e-5)

    # 6) bf16 feature/weight stream (halves dominant DMA), f32 math after.
    m6, s6 = normal_tanh_policy(feats2, w_mean, b_mean, w_logstd, b_logstd,
                                temperature=1.0, compute_dtype=jnp.bfloat16)
    jax.block_until_ready((m6, s6))
    fb = feats2.astype(jnp.bfloat16)
    rm6 = jnp.dot(fb, w_mean.astype(jnp.bfloat16),
                  preferred_element_type=jnp.float32)
    rls6 = jnp.dot(fb, w_logstd.astype(jnp.bfloat16),
                   preferred_element_type=jnp.float32)
    rls6 = LOG_STD_MIN + (LOG_STD_MAX - LOG_STD_MIN) * 0.5 * (1.0 + jnp.tanh(rls6))
    rs6 = jnp.exp(rls6)
    assert jnp.allclose(m6, rm6, atol=1e-2, rtol=1e-2)
    assert jnp.allclose(s6, rs6, atol=1e-2, rtol=1e-2)

    # Deterministic action / mode of TanhTransform(MultivariateNormal) = tanh(means).
    _ = jnp.tanh(means)

    print("KERNEL_OK")
</pallas_src>

<mosaic_0001>
module attributes {stable_mosaic.version = 11 : i64} {
  func.func @_policy_kernel(%arg0: i32, %arg1: memref<8x32xf32, #tpu.memory_space<vmem>>, %arg2: memref<16x32xf32, #tpu.memory_space<vmem>>, %arg3: memref<16x1xf32, #tpu.memory_space<vmem>>, %arg4: memref<16x8xf32, #tpu.memory_space<vmem>>) attributes {dimension_semantics = [#tpu.dimension_semantics<parallel>], iteration_bounds = array<i64: 1>, scalar_prefetch = 0 : i64, scratch_operands = 0 : i64, tpu.core_type = #tpu.core_type<tc>, window_params = [{transform_indices = @transform_0, window_bounds = array<i64: 8, 32>}, {pipeline_mode = #tpu.pipeline_mode<synchronous>, transform_indices = @transform_1, window_bounds = array<i64: 16, 32>}, {pipeline_mode = #tpu.pipeline_mode<synchronous>, transform_indices = @transform_2, window_bounds = array<i64: 16, 1>}, {transform_indices = @transform_3, window_bounds = array<i64: 16, 8>}]} {
    %c0 = arith.constant 0 : index
    %c0_0 = arith.constant 0 : index
    %0 = vector.load %arg2[%c0, %c0_0] : memref<16x32xf32, #tpu.memory_space<vmem>>, vector<16x32xf32>
    %c0_1 = arith.constant 0 : index
    %c0_2 = arith.constant 0 : index
    %1 = vector.load %arg1[%c0_1, %c0_2] : memref<8x32xf32, #tpu.memory_space<vmem>>, vector<8x32xf32>
    %cst = arith.constant dense<0.000000e+00> : vector<16x8xf32>
    %2 = tpu.matmul %0, %1, %cst {dimension_numbers = #tpu.dot_dimension_numbers<[1], [1], [0], [0], [0, 0, 1, 0], [], []>} : vector<16x32xf32>, vector<8x32xf32>, vector<16x8xf32> -> vector<16x8xf32>
    %c0_3 = arith.constant 0 : index
    %c0_4 = arith.constant 0 : index
    %3 = vector.load %arg3[%c0_3, %c0_4] : memref<16x1xf32, #tpu.memory_space<vmem>>, vector<16x1xf32>
    %4 = vector.broadcast %3 : vector<16x1xf32> to vector<16x8xf32>
    %5 = arith.addf %2, %4 : vector<16x8xf32>
    %6 = vector.extract_strided_slice %5 {offsets = [0, 0], sizes = [8, 8], strides = [1, 1]} : vector<16x8xf32> to vector<8x8xf32>
    %c0_5 = arith.constant 0 : index
    %c0_6 = arith.constant 0 : index
    %7 = vector.load %arg4[%c0_5, %c0_6] : memref<16x8xf32, #tpu.memory_space<vmem>>, vector<8x8xf32>
    tpu.vector_store %arg4[%c0_5, %c0_6], %6 {strides = array<i32>} : memref<16x8xf32, #tpu.memory_space<vmem>>, vector<8x8xf32>,
    %8 = vector.extract_strided_slice %5 {offsets = [8, 0], sizes = [8, 8], strides = [1, 1]} : vector<16x8xf32> to vector<8x8xf32>
    %9 = math.tanh %8 : vector<8x8xf32>
    %cst_7 = arith.constant 1.000000e+00 : f32
    %10 = vector.broadcast %cst_7 : f32 to vector<8x8xf32>
    %11 = arith.addf %10, %9 : vector<8x8xf32>
    %cst_8 = arith.constant 6.000000e+00 : f32
    %12 = vector.broadcast %cst_8 : f32 to vector<8x8xf32>
    %13 = arith.mulf %12, %11 : vector<8x8xf32>
    %cst_9 = arith.constant -1.000000e+01 : f32
    %14 = vector.broadcast %cst_9 : f32 to vector<8x8xf32>
    %15 = arith.addf %14, %13 : vector<8x8xf32>
    %16 = math.exp %15 : vector<8x8xf32>
    %c8 = arith.constant 8 : index
    %c0_10 = arith.constant 0 : index
    %17 = vector.load %arg4[%c8, %c0_10] : memref<16x8xf32, #tpu.memory_space<vmem>>, vector<8x8xf32>
    tpu.vector_store %arg4[%c8, %c0_10], %16 {strides = array<i32>} : memref<16x8xf32, #tpu.memory_space<vmem>>, vector<8x8xf32>,
    return
  }
  func.func @transform_0(%arg0: i32) -> (i32, i32) {
    %c0_i32 = arith.constant 0 : i32
    %c0_i32_0 = arith.constant 0 : i32
    return %arg0, %c0_i32 : i32, i32
  }
  func.func @transform_1(%arg0: i32) -> (i32, i32) {
    %c0_i32 = arith.constant 0 : i32
    %c0_i32_0 = arith.constant 0 : i32
    %c0_i32_1 = arith.constant 0 : i32
    return %c0_i32, %c0_i32_0 : i32, i32
  }
  func.func @transform_2(%arg0: i32) -> (i32, i32) {
    %c0_i32 = arith.constant 0 : i32
    %c0_i32_0 = arith.constant 0 : i32
    %c0_i32_1 = arith.constant 0 : i32
    return %c0_i32, %c0_i32_0 : i32, i32
  }
  func.func @transform_3(%arg0: i32) -> (i32, i32) {
    %c0_i32 = arith.constant 0 : i32
    %c0_i32_0 = arith.constant 0 : i32
    return %c0_i32, %arg0 : i32, i32
  }
}

</mosaic_0001>

<bundles_post_ra>
// kernel: tpu_custom_call.1
= control target key start
LH: loop header
LB: loop body
LE: loop exit
PB: predicated region body
PF: predicated region fallthrough
CT: control target
= control target key end

     0   :  { %8 = vsyncpa [#allocation3], 0  ;;  %s180_s12 = smov [#allocation2]   ;;  %s223_s0 = inlined_call_operand.hbm [shape: f32[8,32], index: 0, kind: input, shape index: {}]   ;;  %s224_s1 = inlined_call_operand.vmem [shape: f32[16,32], index: 1, kind: input, shape index: {}]   ;;  %s225_s2 = inlined_call_operand.vmem [shape: f32[16,1], index: 2, kind: input, shape index: {}]   ;;  %s226_s3 = inlined_call_operand.vmem [shape: f32[16,8], index: 3, kind: output, shape index: {}]  }
   0x1   :  { %s15_s13 = sshll.u32 %s180_s12, 4  ;;  %s16_s13 = int_to_ptr.vmem [resolvable:$true] %s15_s13 }
   0x2   :  { %s166_s14 = scalar_lea.vmem %s16_s13, 128  ;;  %p171_p1 = scmp.lt.s32.totalorder %s16_s13, %s16_s13 }
   0x3   :  { %p167_p0 = scmp.ne.s32.totalorder %s16_s13, %s166_s14  ;;  %p172_p2 = scmp.lt.s32.totalorder %s166_s14, %s166_s14 }
   0x5   :  { %p173_p3 = por %p172_p2, %p171_p1 }
   0x7   :  { %p174_p4 = pnand %p173_p3, %p167_p0 }
   0x9   :  { %177 = shalt.err (!%p174_p4)
}
   0xa   :  { %18 = dma.hbm_to_vmem [thread:$0]  %s223_s0, 128, %s16_s13, [#allocation3]  }
   0xb   :  { %178 = dma.done.wait [#allocation3], 128  }
   0xc   :  { %179 = vsyncadd [#allocation3], 4294967168  ;;  %v181_v0 = vmov 0   ;;  %vm41_vm0 = vcmask 261120   ;;  %v28_v1 = vld [vmem:[#allocation2] sm:$0xff]  ;;  %v30_v3 = vld [vmem:[%s225_s2 + $0x8] sm:$0xff] }
   0xd   :  { %153 = vset.pattern.permute.xlu0 %v181_v0  ;;  %v26_v2 = vld [vmem:[%s224_s1] sm:$0xff]  ;;  %146 = vmatprep.subr.msk.mxu0 %vm41_vm0, %v28_v1  ;;  %v27_v4 = vld [vmem:[%s224_s1 + $0x8] sm:$0xff]  ;;  %vm126_vm1 = vcmask 64512  }
   0xe   :  { %148 = vmatprep.mubr.msk.f32.mxu0 %vm41_vm0, %v26_v2  ;;  %147 = vmatpush3.xpose.msk.msra.mxu0 %vm41_vm0, %v28_v1  ;;  %v29_v5 = vld [vmem:[%s225_s2] sm:$0xff] }
   0xf   :  { %38 = vperm.xlu0 %153, %v30_v3  }
  0x11   :  { %149 = vmatmul.mubr.msk.f32.vlgmr.msra.gmra.mxu0 %vm41_vm0, %v27_v4 }
  0x13   :  { %33 = vperm.xlu0 %153, %v29_v5  }
  0x8a   :  { %v39_v6 = vpop.permute.xlu0 %38 }
  0x8e   :  { %v34_v9 = vpop.permute.xlu0 %33 }
  0xd1   :  { %v150_v7 = vpop.f32.mrf.mxu0 }
  0xd2   :  { %v123_v8 = vadd.f32 %v150_v7, %v39_v6 }
  0xd3   :  { %v117_v10 = vpop.f32.mrf.mxu0 }
  0xd4   :  { %154 = vtanh.f32 %v123_v8  ;;  %v118_v11 = vadd.f32 %v117_v10, %v34_v9 }
  0xd6   :  { %127 = vst.msk [vmem:[%s226_s3] sm:$0xff] %vm126_vm1, %v118_v11 }
  0xe1   :  { %v155_v12 = vpop.eup %154 }
  0xe2   :  { %v129_v13 = vadd.f32 1.0, %v155_v12 }
  0xe4   :  { %v130_v14 = vmul.f32 6.0, %v129_v13 }
  0xe6   :  { %v131_v15 = vadd.f32 -10.0, %v130_v14 }
  0xe8   :  { %v132_v16 = vmul.f32 1.442695, %v131_v15 }
  0xea   :  { %156 = vpow2.f32 %v132_v16 }
  0xf7   :  { %v157_v17 = vpop.eup %156 }
  0xf8   :  { %134 = vst.msk [vmem:[%s226_s3 + $0x8] sm:$0xff] %vm126_vm1, %v157_v17 }
  0xf9   :  { %139 = vsyncpa [#allocation3], 1 }

</bundles_post_ra>
